<compile_context>
chip_gen: v7x
topology: tpu7x:2x2x1
jax: 0.10.0
libtpu: 0.0.40
codegen_flags: <defaults>
</compile_context>

<pallas_src>
import math

import jax
import jax.numpy as jnp
from jax.experimental import pallas as pl
from jax.experimental.pallas import tpu as pltpu


def _layer_scale_kernel(x_ref, gamma_ref, o_ref):
    # x_ref: (tr, td); gamma_ref: (1, td) broadcasts over rows.
    # 1 vld + 1 vmul + 1 vst per vreg -> HBM-bandwidth bound on every gen;
    # no compute-side tricks needed.
    o_ref[...] = x_ref[...] * gamma_ref[...]


def _round_down(x: int, m: int) -> int:
    return (x // m) * m


def _round_up(x: int, m: int) -> int:
    return ((x + m - 1) // m) * m


def _vmem_capacity_bytes() -> int:
    try:
        cap = int(pltpu.get_tpu_info().vmem_capacity_bytes)
        if cap > 0:
            return cap
    except Exception:
        pass
    return 64 << 20  # conservative (v7x per-TC) fallback


_MIN_GRID_STEPS = 4        # >= 2 steps per TC on v7x; >= pipeline depth on v5e/v6e.
_MAX_TILE_BYTES = 8 << 20  # roofline saturates well below this; keeps step overhead tiny.


def _choose_tiles(rows: int, dim: int, itemsize: int):
    """Pick (tr, tile_dim) so every tile fits the budget and the grid has
    enough steps for pipelining / dual-TC sharding."""
    vmem = _vmem_capacity_bytes()
    # Generation-aware split floor: v7x (64 MiB VMEM, ~3.2 TB/s HBM) pays a
    # larger relative per-step cost, so don't shrink tiles below ~4 MiB there.
    split_floor_bytes = (4 << 20) if vmem <= (64 << 20) else (1 << 20)

    sub = max(8, 32 // itemsize)  # sublane multiple: 8 f32 / 16 bf16 / 32 int8

    # Channel tile (applied in every path so even a huge dim fits the budget;
    # the last dim-block may be ragged -- Pallas masks it).
    if sub * dim * itemsize > _MAX_TILE_BYTES:
        tile_dim = max(128, _round_down(_MAX_TILE_BYTES // (sub * itemsize), 128))
        tile_dim = min(tile_dim, _round_up(dim, 128))
    else:
        tile_dim = dim
    n_dim_steps = pl.cdiv(dim, tile_dim)

    # Row tile.
    if rows <= sub:
        tr = rows  # full-extent block
    else:
        tr_cap = max(sub, _round_down(_MAX_TILE_BYTES // (tile_dim * itemsize), sub))
        tr = min(tr_cap, rows)
        steps = pl.cdiv(rows, tr) * n_dim_steps
        if steps < _MIN_GRID_STEPS:
            want_row_steps = pl.cdiv(_MIN_GRID_STEPS, n_dim_steps)
            tr_want = _round_up(pl.cdiv(rows, want_row_steps), sub)
            tr_floor = max(sub, _round_down(split_floor_bytes // (tile_dim * itemsize), sub))
            tr_new = max(tr_want, tr_floor)
            if tr_new < tr:  # only shrink; never exceed the cap
                tr = tr_new

    n_row_steps = pl.cdiv(rows, tr)
    return tr, tile_dim, n_row_steps, n_dim_steps


def layer_scale(x: jax.Array, gamma: jax.Array, *, donate_input: bool = False) -> jax.Array:
    """y = x * gamma with gamma.shape == (x.shape[-1],)  (timm LayerScale forward).

    `donate_input=True` aliases x's buffer to the output (functional analogue of
    the PyTorch `inplace=True` path); semantics are identical either way.
    """
    orig_shape = x.shape
    orig_dim = orig_shape[-1]
    assert gamma.shape == (orig_dim,), (gamma.shape, orig_dim)

    gamma_vec = gamma.astype(x.dtype)
    x2d = x.reshape(-1, orig_dim)
    rows = x2d.shape[0]
    dim = orig_dim

    if rows == 0 or dim == 0:
        return (x2d * gamma_vec[None, :]).reshape(orig_shape)

    # --- Lane-dense fold: make the lane (last) dim a multiple of 128 by folding
    # k rows into it (metadata-only reshape + tiled gamma).  If rows % k != 0,
    # fold the largest prefix and handle the < k leftover rows with a plain XLA
    # multiply so >99% of stores stay full-width vst instead of masked partials.
    rem_y = None
    if dim % 128 != 0:
        k = 128 // math.gcd(dim, 128)
        main_rows = (rows // k) * k
        if k > 1 and main_rows > 0:
            if main_rows < rows:
                rem_y = x2d[main_rows:] * gamma_vec[None, :]
                x2d = x2d[:main_rows]
            rows = main_rows // k
            dim = orig_dim * k
            x2d = x2d.reshape(rows, dim)
            gamma_vec = jnp.tile(gamma_vec, k)
        # else: rows < k -> tiny tensor; narrow-lane path is fine.

    itemsize = x.dtype.itemsize
    tr, tile_dim, n_row_steps, n_dim_steps = _choose_tiles(rows, dim, itemsize)
    gamma2d = gamma_vec.reshape(1, dim)

    # Scoped-VMEM limit derived from the actual tile: 2 bufs x (in + out) tile
    # plus gamma plus headroom, never more than 3/4 of physical VMEM.
    tile_bytes = tr * tile_dim * itemsize
    vmem_cap = _vmem_capacity_bytes()
    vmem_limit = int(min(max((5 * (4 * tile_bytes)) // 4 + (2 << 20), 16 << 20),
                         (vmem_cap * 3) // 4))

    if n_dim_steps == 1:
        # 1-D grid over rows; gamma's block index is constant -> fetched once.
        grid = (n_row_steps,)
        in_specs = [
            pl.BlockSpec((tr, dim), lambda i: (i, 0)),
            pl.BlockSpec((1, dim), lambda i: (0, 0)),
        ]
        out_specs = pl.BlockSpec((tr, dim), lambda i: (i, 0))
        dim_sem = ("parallel",)
    else:
        # Channel axis outermost so gamma's block index only changes per channel
        # stripe (no per-step gamma DMA); rows are the inner axis.
        grid = (n_dim_steps, n_row_steps)
        in_specs = [
            pl.BlockSpec((tr, tile_dim), lambda j, i: (i, j)),
            pl.BlockSpec((1, tile_dim), lambda j, i: (0, j)),
        ]
        out_specs = pl.BlockSpec((tr, tile_dim), lambda j, i: (i, j))
        dim_sem = ("parallel", "parallel")

    out2d = pl.pallas_call(
        _layer_scale_kernel,
        out_shape=jax.ShapeDtypeStruct((rows, dim), x.dtype),
        grid_spec=pltpu.PrefetchScalarGridSpec(
            num_scalar_prefetch=0,
            grid=grid,
            in_specs=in_specs,
            out_specs=out_specs,
        ),
        compiler_params=pltpu.CompilerParams(
            dimension_semantics=dim_sem,
            vmem_limit_bytes=vmem_limit,
        ),
        input_output_aliases=({0: 0} if donate_input else {}),
    )(x2d, gamma2d)

    out_flat = out2d.reshape(-1, orig_dim)
    if rem_y is not None:
        out_flat = jnp.concatenate([out_flat, rem_y], axis=0)
    return out_flat.reshape(orig_shape)


if __name__ == "__main__":
    init_values = 1e-5

    # 1) Module-sized example: (batch=2, seq=8, hidden=32) — exercises the
    #    lane-dense fold (32 -> 128) with no remainder.
    dim = 32
    gamma = jnp.ones((dim,), dtype=jnp.float32) * init_values
    x = jax.random.normal(jax.random.PRNGKey(0), (2, 8, dim), dtype=jnp.float32)
    y = jax.block_until_ready(layer_scale(x, gamma))
    assert y.shape == x.shape and y.dtype == x.dtype
    assert jnp.allclose(y, x * gamma, atol=1e-6, rtol=1e-6)

    # 2) dim % 128 == 0 path (no fold).
    dim2 = 128
    gamma2 = jnp.ones((dim2,), dtype=jnp.float32) * init_values
    x2 = jax.random.normal(jax.random.PRNGKey(0), (4, 64, dim2), dtype=jnp.float32)
    y2 = jax.block_until_ready(layer_scale(x2, gamma2))
    assert jnp.allclose(y2, x2 * gamma2, atol=1e-6, rtol=1e-6)

    # 3) Awkward row count with narrow dim: prefix fold + XLA remainder path.
    dim3 = 32
    gamma3 = jnp.ones((dim3,), dtype=jnp.float32) * init_values
    x3 = jax.random.normal(jax.random.PRNGKey(0), (3, 7, dim3), dtype=jnp.float32)
    y3 = jax.block_until_ready(layer_scale(x3, gamma3))
    assert y3.shape == x3.shape
    assert jnp.allclose(y3, x3 * gamma3, atol=1e-6, rtol=1e-6)

    # 4) bf16 path (sublane multiple = 16).
    dim4 = 256
    gamma4 = (jnp.ones((dim4,), dtype=jnp.float32) * init_values)
    x4 = jax.random.normal(jax.random.PRNGKey(0), (2, 33, dim4), dtype=jnp.bfloat16)
    y4 = jax.block_until_ready(layer_scale(x4, gamma4))
    assert jnp.allclose(jnp.asarray(y4, jnp.float32),
                        jnp.asarray(x4 * gamma4.astype(jnp.bfloat16), jnp.float32))

    print("KERNEL_OK")
</pallas_src>

<mosaic_0001>
module attributes {stable_mosaic.version = 11 : i64} {
  func.func @_layer_scale_kernel(%arg0: i32, %arg1: memref<4x128xf32, #tpu.memory_space<vmem>>, %arg2: memref<1x128xf32, #tpu.memory_space<vmem>>, %arg3: memref<4x128xf32, #tpu.memory_space<vmem>>) attributes {dimension_semantics = [#tpu.dimension_semantics<parallel>], iteration_bounds = array<i64: 1>, scalar_prefetch = 0 : i64, scratch_operands = 0 : i64, tpu.core_type = #tpu.core_type<tc>, window_params = [{transform_indices = @transform_0, window_bounds = array<i64: 4, 128>}, {pipeline_mode = #tpu.pipeline_mode<synchronous>, transform_indices = @transform_1, window_bounds = array<i64: 1, 128>}, {transform_indices = @transform_2, window_bounds = array<i64: 4, 128>}]} {
    %c0 = arith.constant 0 : index
    %c0_0 = arith.constant 0 : index
    %0 = vector.load %arg1[%c0, %c0_0] : memref<4x128xf32, #tpu.memory_space<vmem>>, vector<4x128xf32>
    %c0_1 = arith.constant 0 : index
    %c0_2 = arith.constant 0 : index
    %1 = vector.load %arg2[%c0_1, %c0_2] : memref<1x128xf32, #tpu.memory_space<vmem>>, vector<1x128xf32>
    %2 = vector.broadcast %1 : vector<1x128xf32> to vector<4x128xf32>
    %3 = arith.mulf %0, %2 : vector<4x128xf32>
    %c0_3 = arith.constant 0 : index
    %c0_4 = arith.constant 0 : index
    %4 = vector.load %arg3[%c0_3, %c0_4] : memref<4x128xf32, #tpu.memory_space<vmem>>, vector<4x128xf32>
    tpu.vector_store %arg3[%c0_3, %c0_4], %3 {strides = array<i32>} : memref<4x128xf32, #tpu.memory_space<vmem>>, vector<4x128xf32>,
    return
  }
  func.func @transform_0(%arg0: i32) -> (i32, i32) {
    %c0_i32 = arith.constant 0 : i32
    %c0_i32_0 = arith.constant 0 : i32
    return %arg0, %c0_i32 : i32, i32
  }
  func.func @transform_1(%arg0: i32) -> (i32, i32) {
    %c0_i32 = arith.constant 0 : i32
    %c0_i32_0 = arith.constant 0 : i32
    %c0_i32_1 = arith.constant 0 : i32
    return %c0_i32, %c0_i32_0 : i32, i32
  }
  func.func @transform_2(%arg0: i32) -> (i32, i32) {
    %c0_i32 = arith.constant 0 : i32
    %c0_i32_0 = arith.constant 0 : i32
    return %arg0, %c0_i32 : i32, i32
  }
}

</mosaic_0001>

<bundles_post_ra>
// kernel: tpu_custom_call.1
= control target key start
LH: loop header
LB: loop body
LE: loop exit
PB: predicated region body
PF: predicated region fallthrough
CT: control target
= control target key end

     0   :  { %7 = vsyncpa [#allocation3], 0  ;;  %s144_s0 = inlined_call_operand.hbm [shape: f32[4,128], index: 0, kind: input, shape index: {}]   ;;  %s145_s1 = inlined_call_operand.vmem [shape: f32[1,128], index: 1, kind: input, shape index: {}]   ;;  %s146_s2 = inlined_call_operand.hbm [shape: f32[4,128], index: 2, kind: output, shape index: {}]  }
   0x1   :  { %8 = vsyncpa [#allocation4], 0  ;;  %s100_s9 = smov [#allocation2]   ;;  %s52_s13 = scalar_lea.hbm %s144_s0, 64 }
   0x2   :  { %s15_s10 = sshll.u32 %s100_s9, 4  ;;  %p53_p0 = scmp.ne.s32.totalorder %s144_s0, %s52_s13  ;;  %s16_s10 = int_to_ptr.vmem [resolvable:$true] %s15_s10 }
   0x3   :  { %p56_p1 = scmp.lt.u32.totalorder %s52_s13, %s144_s0 }
   0x5   :  { %p58_p2 = pnand %p56_p1, %p53_p0 }
   0x7   :  { %61 = shalt.err (!%p58_p2)
}
   0x8   :  { %s62_s18 = scalar_lea.vmem %s16_s10, 64  ;;  %p67_p4 = scmp.lt.s32.totalorder %s16_s10, %s16_s10 }
   0x9   :  { %p63_p3 = scmp.ne.s32.totalorder %s16_s10, %s62_s18  ;;  %p68_p5 = scmp.lt.s32.totalorder %s62_s18, %s62_s18 }
   0xb   :  { %p69_p6 = por %p68_p5, %p67_p4 }
   0xd   :  { %p70_p7 = pnand %p69_p6, %p63_p3 }
   0xf   :  { %73 = shalt.err (!%p70_p7)
}
  0x10   :  { %18 = dma.hbm_to_vmem [thread:$0]  %s144_s0, 64, %s16_s10, [#allocation3]  }
  0x11   :  { %96 = dma.done.wait [#allocation3], 64  }
  0x12   :  { %97 = vsyncadd [#allocation3], 4294967232  ;;  %s101_s21 = smov [#allocation5]   ;;  %v24_v0 = vld [vmem:[#allocation2] sm:$0xf] }
  0x13   :  { %s40_s22 = sshll.u32 %s101_s21, 4  ;;  %v49_v1 = vld [vmem:[%s145_s1] ss:$0 sm:$0xff]  ;;  %s41_s22 = int_to_ptr.vmem [resolvable:$true] %s40_s22 }
  0x14   :  { %v32_v2 = vmul.f32 %v49_v1, %v24_v0  ;;  %s74_s25 = scalar_lea.vmem %s41_s22, 64  ;;  %p79_p9 = scmp.lt.s32.totalorder %s41_s22, %s41_s22 }
  0x15   :  { %p75_p8 = scmp.ne.s32.totalorder %s41_s22, %s74_s25  ;;  %p80_p10 = scmp.lt.s32.totalorder %s74_s25, %s74_s25 }
  0x16   :  { %33 = vst [vmem:[#allocation5] sm:$0xf] %v32_v2 }
  0x17   :  { %p81_p11 = por %p80_p10, %p79_p9 }
  0x19   :  { %p82_p12 = pnand %p81_p11, %p75_p8 }
  0x1b   :  { %85 = shalt.err (!%p82_p12)
}
  0x1c   :  { %s86_s27 = scalar_lea.hbm %s146_s2, 64 }
  0x1d   :  { %p87_p13 = scmp.ne.s32.totalorder %s146_s2, %s86_s27  ;;  %p90_p0 = scmp.lt.u32.totalorder %s86_s27, %s146_s2 }
  0x1f   :  { %p92_p1 = pnand %p90_p0, %p87_p13 }
  0x21   :  { %95 = shalt.err (!%p92_p1)
}
  0x22   :  { %43 = dma.vmem_to_hbm [thread:$0]  %s41_s22, 64, %s146_s2, [#allocation4]  }
  0x23   :  { %98 = dma.done.wait [#allocation4], 64  }
  0x24   :  { %99 = vsyncadd [#allocation4], 4294967232 }
  0x25   :  { %47 = vsyncpa [#allocation3], 1 }
  0x26   :  { %48 = vsyncpa [#allocation4], 1 }

</bundles_post_ra>
